<compile_context>
chip_gen: v7x
topology: tpu7x:2x2x1
jax: 0.10.0
libtpu: 0.0.40
codegen_flags: <defaults>
</compile_context>

<pallas_src>
import jax
import jax.numpy as jnp
from jax.experimental import pallas as pl
from jax.experimental.pallas import tpu as pltpu


# ----------------------------------------------------------------------------
# Pallas kernel: fused FiLM block (conv1x1 -> relu -> conv1x1 -> gamma*x+beta
# -> relu) + scalar projection, on one lane tile of fused batch*pixel columns.
# ----------------------------------------------------------------------------
def _film_proj_kernel(x_ref, gb_ref, w1t_ref, b1_ref, w2t_ref, wpt_ref, bp_ref,
                      out_ref):
    # x_ref   : [C, TM]   input channels x (batch*pixel) lane tile
    # gb_ref  : [2D, TM]  rows [0:D] = gamma, rows [D:2D] = beta + conv2_b*gamma
    # w1t_ref : [imm, C]  conv1 1x1 weight (transposed), b1_ref: [imm, 1] bias
    # w2t_ref : [D, imm]  conv2 1x1 weight (transposed; its bias is folded into beta)
    # wpt_ref : [1, D]    projection weight, bp_ref: [1, 1] projection bias
    # out_ref : [1, TM]   lane-dense projected output
    x = x_ref[...]

    # conv1 (1x1) + ReLU : [imm, C] @ [C, TM] -> [imm, TM]
    h = jnp.dot(w1t_ref[...], x, preferred_element_type=jnp.float32) + b1_ref[...]
    h = jnp.maximum(h, 0.0)

    # conv2 (1x1), bias folded into beta : [D, imm] @ [imm, TM] -> [D, TM]
    z = jnp.dot(w2t_ref[...], h, preferred_element_type=jnp.float32)

    d = w2t_ref.shape[0]
    gamma = gb_ref[:d, :]
    beta = gb_ref[d:, :]
    f = jnp.maximum(z * gamma + beta, 0.0)          # FiLM + ReLU, [D, TM]

    # final projection Linear(D, 1) -> lane-dense [1, TM] row
    out = jnp.dot(wpt_ref[...], f, preferred_element_type=jnp.float32) + bp_ref[...]
    out_ref[...] = out.astype(out_ref.dtype)


def film_projection_pallas(x_bpc, mission_enc, params):
    """x_bpc: [B, P, C] channels-last pixels; mission_enc: [B, F]. Returns [B, P]."""
    B, P, C = x_bpc.shape
    conv1_wt, conv1_b = params['conv1_wt'], params['conv1_b']
    conv2_wt, conv2_b = params['conv2_wt'], params['conv2_b']
    proj_wt, proj_b = params['proj_wt'], params['proj_b']
    imm = conv1_wt.shape[0]
    D = conv2_wt.shape[0]
    M = B * P

    # FiLM gamma/beta hoisted out of the kernel (tiny [B,F]x[F,D] matmuls);
    # fold conv2 bias into beta: (W2 h + b2)*g + b == (W2 h)*g + (b + g*b2).
    gamma = mission_enc @ params['film_w_w'] + params['film_w_b']      # [B, D]
    beta = mission_enc @ params['film_b_w'] + params['film_b_b']       # [B, D]
    beta_eff = beta + gamma * conv2_b                                  # [B, D]

    # Transposed, weight-stationary layout: channels on sublanes, batch*pixels on lanes.
    x_cm = x_bpc.reshape(M, C).T                                                # [C, M]
    gamma_cm = jnp.broadcast_to(gamma[:, None, :], (B, P, D)).reshape(M, D).T   # [D, M]
    beta_cm = jnp.broadcast_to(beta_eff[:, None, :], (B, P, D)).reshape(M, D).T # [D, M]
    gb = jnp.concatenate([gamma_cm, beta_cm], axis=0)                           # [2D, M]

    # Pad the fused lane axis to a multiple of 128 (padding columns are discarded).
    M_pad = ((M + 127) // 128) * 128
    if M_pad != M:
        pad = ((0, 0), (0, M_pad - M))
        x_cm = jnp.pad(x_cm, pad)
        gb = jnp.pad(gb, pad)

    # Lane tile: largest of these dividing M_pad (always >= 128). Small enough to
    # stay far under VMEM on v5e/v6e/v7x; >1 tile lets v7x split across its 2 TCs.
    TM = next(t for t in (2048, 1024, 512, 256, 128) if M_pad % t == 0)

    out = pl.pallas_call(
        _film_proj_kernel,
        out_shape=jax.ShapeDtypeStruct((1, M_pad), jnp.float32),
        grid_spec=pltpu.PrefetchScalarGridSpec(
            num_scalar_prefetch=0,
            grid=(M_pad // TM,),
            in_specs=[
                pl.BlockSpec((C, TM), lambda m: (0, m)),       # x lane tile
                pl.BlockSpec((2 * D, TM), lambda m: (0, m)),   # gamma|beta lane tile
                pl.BlockSpec((imm, C), lambda m: (0, 0)),      # conv1 weight (replicated)
                pl.BlockSpec((imm, 1), lambda m: (0, 0)),      # conv1 bias
                pl.BlockSpec((D, imm), lambda m: (0, 0)),      # conv2 weight
                pl.BlockSpec((1, D), lambda m: (0, 0)),        # projection weight
                pl.BlockSpec((1, 1), lambda m: (0, 0)),        # projection bias
            ],
            out_specs=pl.BlockSpec((1, TM), lambda m: (0, m)),
        ),
        compiler_params=pltpu.CompilerParams(
            dimension_semantics=("parallel",)),
    )(x_cm, gb, conv1_wt, conv1_b, conv2_wt, proj_wt, proj_b)

    return out[0, :M].reshape(B, P)


# ----------------------------------------------------------------------------
# Plain-JAX glue: embeddings + bidirectional GRU (sequential recurrence).
# TODO(synk): the bidirectional GRU recurrence stays in plain JAX (lax.scan); a
# time-sequential scan at these sizes has no meaningful Pallas formulation.
# ----------------------------------------------------------------------------
def _gru_direction(xs, prm, reverse):
    # xs: [T, B, E], PyTorch GRU gate order (r, z, n)
    B = xs.shape[1]
    E = prm['w_hh'].shape[1]
    h0 = jnp.zeros((B, E), jnp.float32)

    def step(h, x):
        gi = x @ prm['w_ih'].T + prm['b_ih']
        gh = h @ prm['w_hh'].T + prm['b_hh']
        i_r, i_z, i_n = jnp.split(gi, 3, axis=-1)
        h_r, h_z, h_n = jnp.split(gh, 3, axis=-1)
        r = jax.nn.sigmoid(i_r + h_r)
        z = jax.nn.sigmoid(i_z + h_z)
        n = jnp.tanh(i_n + r * h_n)
        return (1.0 - z) * n + z * h, None

    h_final, _ = jax.lax.scan(step, h0, xs, reverse=reverse)
    return h_final


def init_params(key, attrib_offsets, emb_dim, n_words, imm_dim):
    len_offsets = len(attrib_offsets) - 1
    assert len_offsets == 2, "mission encoding dim (2*emb_dim) must equal emb_dim*len_offsets"
    C = emb_dim * len_offsets       # FiLM conv in-channels
    F = 2 * emb_dim                 # FiLM linear in-features (bi-GRU final hidden concat)
    E = emb_dim
    keys = jax.random.split(key, 12)

    def normed_linear(k, fan_in, fan_out):
        # matches initialize_parameters: N(0,1) rows normalized to unit L2 norm
        w = jax.random.normal(k, (fan_out, fan_in), jnp.float32)
        return w / jnp.sqrt(jnp.sum(w * w, axis=1, keepdims=True))

    def gru_dir(k):
        k1, k2, k3, k4 = jax.random.split(k, 4)
        s = 1.0 / jnp.sqrt(E)
        return dict(
            w_ih=jax.random.uniform(k1, (3 * E, E), jnp.float32, -s, s),
            w_hh=jax.random.uniform(k2, (3 * E, E), jnp.float32, -s, s),
            b_ih=jax.random.uniform(k3, (3 * E,), jnp.float32, -s, s),
            b_hh=jax.random.uniform(k4, (3 * E,), jnp.float32, -s, s),
        )

    s1 = 1.0 / jnp.sqrt(C)
    s2 = 1.0 / jnp.sqrt(imm_dim)
    sp = 1.0 / jnp.sqrt(imm_dim)
    p = {
        'attrib_offsets': jnp.asarray(attrib_offsets, jnp.int32),
        'attrib_emb': 0.5 * jax.random.normal(keys[0], (attrib_offsets[-1], E), jnp.float32),
        'word_emb': 0.5 * jax.random.normal(keys[1], (n_words, E), jnp.float32),
        'gru_fwd': gru_dir(keys[2]),
        'gru_bwd': gru_dir(keys[3]),
        # FiLM 1x1 convs stored transposed ([out, in]) for the channels-first kernel layout
        'conv1_wt': jax.random.uniform(keys[4], (imm_dim, C), jnp.float32, -s1, s1),
        'conv1_b': jax.random.uniform(keys[5], (imm_dim, 1), jnp.float32, -s1, s1),
        'conv2_wt': jax.random.uniform(keys[6], (imm_dim, imm_dim), jnp.float32, -s2, s2),
        'conv2_b': jax.random.uniform(keys[7], (1, imm_dim), jnp.float32, -s2, s2),
        # FiLM gamma/beta linears (unit-norm rows, zero bias) stored as [F, D]
        'film_w_w': normed_linear(keys[8], F, imm_dim).T,
        'film_w_b': jnp.zeros((1, imm_dim), jnp.float32),
        'film_b_w': normed_linear(keys[9], F, imm_dim).T,
        'film_b_b': jnp.zeros((1, imm_dim), jnp.float32),
        # projection Linear(imm_dim, 1) stored as [1, D]
        'proj_wt': jax.random.uniform(keys[10], (1, imm_dim), jnp.float32, -sp, sp),
        'proj_b': jax.random.uniform(keys[11], (1, 1), jnp.float32, -sp, sp),
    }
    return p


def film_conv_encoder_forward(params, images, missions, use_pallas=True):
    B, H, W, A = images.shape
    E = params['word_emb'].shape[-1]

    # --- mission encoding: word embeddings + bi-GRU final hidden states ---
    mission_words = jnp.take(params['word_emb'], missions, axis=0)   # [B, T, E]
    xs = jnp.transpose(mission_words, (1, 0, 2))                      # [T, B, E] (time major)
    h_f = _gru_direction(xs, params['gru_fwd'], reverse=False)
    h_b = _gru_direction(xs, params['gru_bwd'], reverse=True)
    mission_enc = jnp.concatenate([h_f, h_b], axis=-1)                # [B, 2E]

    # --- per-cell attribute embeddings ---
    offs = params['attrib_offsets'][:A]
    idx = images.astype(jnp.int32) + offs                             # [B, H, W, A]
    sep = jnp.take(params['attrib_emb'], idx, axis=0)                 # [B, H, W, A, E]
    sep_t = jnp.transpose(sep, (0, 3, 1, 2, 4))                       # [B, A, H, W, E]
    P = H * W
    cat = sep.reshape(B, P, A * E)                                    # [B, P, C] (attribute-major channels)

    if use_pallas:
        proj = film_projection_pallas(cat, mission_enc, params)       # [B, P]
    else:  # pure-JAX reference of the fused kernel
        gamma = mission_enc @ params['film_w_w'] + params['film_w_b']
        beta = mission_enc @ params['film_b_w'] + params['film_b_b']
        h = jnp.maximum(cat @ params['conv1_wt'].T + params['conv1_b'][:, 0], 0.0)
        z = h @ params['conv2_wt'].T + params['conv2_b']
        f = jnp.maximum(z * gamma[:, None, :] + beta[:, None, :], 0.0)
        proj = (f @ params['proj_wt'].T)[..., 0] + params['proj_b'][0, 0]

    return proj.reshape(B, H, W, 1), sep_t


if __name__ == "__main__":
    key = jax.random.PRNGKey(0)
    attrib_offsets = [0, 4, 8]    # 2 attribute planes, embedding table of size 8
    emb_dim = 8
    n_words = 12
    imm_dim = 16
    B, H, W, T = 2, 8, 8, 6
    A = len(attrib_offsets) - 1

    k_params, k_img, k_mis = jax.random.split(key, 3)
    params = init_params(k_params, attrib_offsets, emb_dim, n_words, imm_dim)

    images = jax.random.randint(k_img, (B, H, W, A), 0, 4, dtype=jnp.int32)
    missions = jax.random.randint(k_mis, (B, T), 0, n_words, dtype=jnp.int32)

    proj, sep_t = film_conv_encoder_forward(params, images, missions, use_pallas=True)
    proj = jax.block_until_ready(proj)
    sep_t = jax.block_until_ready(sep_t)

    # sanity check against the pure-JAX reference of the same math
    proj_ref, _ = film_conv_encoder_forward(params, images, missions, use_pallas=False)
    assert proj.shape == (B, H, W, 1)
    assert sep_t.shape == (B, A, H, W, emb_dim)
    assert jnp.allclose(proj, proj_ref, rtol=1e-3, atol=1e-3), \
        float(jnp.max(jnp.abs(proj - proj_ref)))

    print("KERNEL_OK")
</pallas_src>

<mosaic_0001>
module attributes {stable_mosaic.version = 11 : i64} {
  func.func @_film_proj_kernel(%arg0: i32, %arg1: memref<16x128xf32, #tpu.memory_space<vmem>>, %arg2: memref<32x128xf32, #tpu.memory_space<vmem>>, %arg3: memref<16x16xf32, #tpu.memory_space<vmem>>, %arg4: memref<16x1xf32, #tpu.memory_space<vmem>>, %arg5: memref<16x16xf32, #tpu.memory_space<vmem>>, %arg6: memref<1x16xf32, #tpu.memory_space<vmem>>, %arg7: memref<1x1xf32, #tpu.memory_space<vmem>>, %arg8: memref<1x128xf32, #tpu.memory_space<vmem>>) attributes {dimension_semantics = [#tpu.dimension_semantics<parallel>], iteration_bounds = array<i64: 1>, scalar_prefetch = 0 : i64, scratch_operands = 0 : i64, tpu.core_type = #tpu.core_type<tc>, window_params = [{transform_indices = @transform_0, window_bounds = array<i64: 16, 128>}, {transform_indices = @transform_1, window_bounds = array<i64: 32, 128>}, {pipeline_mode = #tpu.pipeline_mode<synchronous>, transform_indices = @transform_2, window_bounds = array<i64: 16, 16>}, {pipeline_mode = #tpu.pipeline_mode<synchronous>, transform_indices = @transform_3, window_bounds = array<i64: 16, 1>}, {pipeline_mode = #tpu.pipeline_mode<synchronous>, transform_indices = @transform_4, window_bounds = array<i64: 16, 16>}, {pipeline_mode = #tpu.pipeline_mode<synchronous>, transform_indices = @transform_5, window_bounds = array<i64: 1, 16>}, {pipeline_mode = #tpu.pipeline_mode<synchronous>, transform_indices = @transform_6, window_bounds = array<i64: 1, 1>}, {transform_indices = @transform_7, window_bounds = array<i64: 1, 128>}]} {
    %c0 = arith.constant 0 : index
    %c0_0 = arith.constant 0 : index
    %0 = vector.load %arg1[%c0, %c0_0] : memref<16x128xf32, #tpu.memory_space<vmem>>, vector<16x128xf32>
    %c0_1 = arith.constant 0 : index
    %c0_2 = arith.constant 0 : index
    %1 = vector.load %arg3[%c0_1, %c0_2] : memref<16x16xf32, #tpu.memory_space<vmem>>, vector<16x16xf32>
    %cst = arith.constant dense<0.000000e+00> : vector<16x128xf32>
    %2 = tpu.matmul %1, %0, %cst {dimension_numbers = #tpu.dot_dimension_numbers<[1], [0], [0], [1], [0, 0, 1, 1], [], []>} : vector<16x16xf32>, vector<16x128xf32>, vector<16x128xf32> -> vector<16x128xf32>
    %c0_3 = arith.constant 0 : index
    %c0_4 = arith.constant 0 : index
    %3 = vector.load %arg4[%c0_3, %c0_4] : memref<16x1xf32, #tpu.memory_space<vmem>>, vector<16x1xf32>
    %4 = vector.broadcast %3 : vector<16x1xf32> to vector<16x128xf32>
    %5 = arith.addf %2, %4 : vector<16x128xf32>
    %cst_5 = arith.constant 0.000000e+00 : f32
    %6 = vector.broadcast %cst_5 : f32 to vector<16x128xf32>
    %7 = arith.maximumf %5, %6 : vector<16x128xf32>
    %c0_6 = arith.constant 0 : index
    %c0_7 = arith.constant 0 : index
    %8 = vector.load %arg5[%c0_6, %c0_7] : memref<16x16xf32, #tpu.memory_space<vmem>>, vector<16x16xf32>
    %cst_8 = arith.constant dense<0.000000e+00> : vector<16x128xf32>
    %9 = tpu.matmul %8, %7, %cst_8 {dimension_numbers = #tpu.dot_dimension_numbers<[1], [0], [0], [1], [0, 0, 1, 1], [], []>} : vector<16x16xf32>, vector<16x128xf32>, vector<16x128xf32> -> vector<16x128xf32>
    %c0_9 = arith.constant 0 : index
    %c0_10 = arith.constant 0 : index
    %10 = vector.load %arg2[%c0_9, %c0_10] : memref<32x128xf32, #tpu.memory_space<vmem>>, vector<16x128xf32>
    %c16 = arith.constant 16 : index
    %c0_11 = arith.constant 0 : index
    %11 = vector.load %arg2[%c16, %c0_11] : memref<32x128xf32, #tpu.memory_space<vmem>>, vector<16x128xf32>
    %12 = arith.mulf %9, %10 : vector<16x128xf32>
    %13 = arith.addf %12, %11 : vector<16x128xf32>
    %cst_12 = arith.constant 0.000000e+00 : f32
    %14 = vector.broadcast %cst_12 : f32 to vector<16x128xf32>
    %15 = arith.maximumf %13, %14 : vector<16x128xf32>
    %c0_13 = arith.constant 0 : index
    %c0_14 = arith.constant 0 : index
    %16 = vector.load %arg6[%c0_13, %c0_14] : memref<1x16xf32, #tpu.memory_space<vmem>>, vector<1x16xf32>
    %cst_15 = arith.constant dense<0.000000e+00> : vector<1x128xf32>
    %17 = tpu.matmul %16, %15, %cst_15 {dimension_numbers = #tpu.dot_dimension_numbers<[1], [0], [0], [1], [0, 0, 1, 1], [], []>} : vector<1x16xf32>, vector<16x128xf32>, vector<1x128xf32> -> vector<1x128xf32>
    %c0_16 = arith.constant 0 : index
    %c0_17 = arith.constant 0 : index
    %18 = vector.load %arg7[%c0_16, %c0_17] : memref<1x1xf32, #tpu.memory_space<vmem>>, vector<1x1xf32>
    %19 = vector.broadcast %18 : vector<1x1xf32> to vector<1x128xf32>
    %20 = arith.addf %17, %19 : vector<1x128xf32>
    %c0_18 = arith.constant 0 : index
    %c0_19 = arith.constant 0 : index
    %21 = vector.load %arg8[%c0_18, %c0_19] : memref<1x128xf32, #tpu.memory_space<vmem>>, vector<1x128xf32>
    tpu.vector_store %arg8[%c0_18, %c0_19], %20 {strides = array<i32>} : memref<1x128xf32, #tpu.memory_space<vmem>>, vector<1x128xf32>,
    return
  }
  func.func @transform_0(%arg0: i32) -> (i32, i32) {
    %c0_i32 = arith.constant 0 : i32
    %c0_i32_0 = arith.constant 0 : i32
    return %c0_i32, %arg0 : i32, i32
  }
  func.func @transform_1(%arg0: i32) -> (i32, i32) {
    %c0_i32 = arith.constant 0 : i32
    %c0_i32_0 = arith.constant 0 : i32
    return %c0_i32, %arg0 : i32, i32
  }
  func.func @transform_2(%arg0: i32) -> (i32, i32) {
    %c0_i32 = arith.constant 0 : i32
    %c0_i32_0 = arith.constant 0 : i32
    %c0_i32_1 = arith.constant 0 : i32
    return %c0_i32, %c0_i32_0 : i32, i32
  }
  func.func @transform_3(%arg0: i32) -> (i32, i32) {
    %c0_i32 = arith.constant 0 : i32
    %c0_i32_0 = arith.constant 0 : i32
    %c0_i32_1 = arith.constant 0 : i32
    return %c0_i32, %c0_i32_0 : i32, i32
  }
  func.func @transform_4(%arg0: i32) -> (i32, i32) {
    %c0_i32 = arith.constant 0 : i32
    %c0_i32_0 = arith.constant 0 : i32
    %c0_i32_1 = arith.constant 0 : i32
    return %c0_i32, %c0_i32_0 : i32, i32
  }
  func.func @transform_5(%arg0: i32) -> (i32, i32) {
    %c0_i32 = arith.constant 0 : i32
    %c0_i32_0 = arith.constant 0 : i32
    %c0_i32_1 = arith.constant 0 : i32
    return %c0_i32, %c0_i32_0 : i32, i32
  }
  func.func @transform_6(%arg0: i32) -> (i32, i32) {
    %c0_i32 = arith.constant 0 : i32
    %c0_i32_0 = arith.constant 0 : i32
    %c0_i32_1 = arith.constant 0 : i32
    return %c0_i32, %c0_i32_0 : i32, i32
  }
  func.func @transform_7(%arg0: i32) -> (i32, i32) {
    %c0_i32 = arith.constant 0 : i32
    %c0_i32_0 = arith.constant 0 : i32
    return %c0_i32, %arg0 : i32, i32
  }
}

</mosaic_0001>

<bundles_post_ra>
// kernel: tpu_custom_call.1
= control target key start
LH: loop header
LB: loop body
LE: loop exit
PB: predicated region body
PF: predicated region fallthrough
CT: control target
= control target key end

     0   :  { %s596_s0 = inlined_call_operand.vmem [shape: f32[16,128], index: 0, kind: input, shape index: {}]   ;;  %s597_s1 = inlined_call_operand.hbm [shape: f32[32,128], index: 1, kind: input, shape index: {}]   ;;  %s598_s2 = inlined_call_operand.hbm [shape: f32[16,16], index: 2, kind: input, shape index: {}]   ;;  %s599_s3 = inlined_call_operand.vmem [shape: f32[16,1], index: 3, kind: input, shape index: {}]   ;;  %s600_s4 = inlined_call_operand.vmem [shape: f32[16,16], index: 4, kind: input, shape index: {}]   ;;  %s601_s5 = inlined_call_operand.vmem [shape: f32[1,16], index: 5, kind: input, shape index: {}]   ;;  %s602_s6 = inlined_call_operand.<no memory space> [shape: f32[1,1], index: 6, kind: input, shape index: {}]   ;;  %s603_s7 = inlined_call_operand.hbm [shape: f32[1,128], index: 7, kind: output, shape index: {}]  }
   0x1   :  { %v12_v0 = vstv %s602_s6 }
   0x2   :  { %13 = vst [vmem:[#allocation2] sm:$0x1] %v12_v0 }
   0x3   :  { %14 = vsyncpa [#allocation4], 0 }
   0x4   :  { %15 = vsyncpa [#allocation7], 0 }
   0x5   :  { %16 = vsyncpa [#allocation5], 0  ;;  %s482_s26 = smov [#allocation3]   ;;  %s410_s30 = scalar_lea.hbm %s597_s1, 512 }
   0x6   :  { %s24_s27 = sshll.u32 %s482_s26, 4  ;;  %p411_p0 = scmp.ne.s32.totalorder %s597_s1, %s410_s30  ;;  %s25_s27 = int_to_ptr.vmem [resolvable:$true] %s24_s27 }
   0x7   :  { %p414_p1 = scmp.lt.u32.totalorder %s410_s30, %s597_s1 }
   0x9   :  { %p416_p2 = pnand %p414_p1, %p411_p0 }
   0xb   :  { %419 = shalt.err (!%p416_p2)
}
   0xc   :  { %s420_s6 = scalar_lea.vmem %s25_s27, 512  ;;  %p425_p4 = scmp.lt.s32.totalorder %s25_s27, %s25_s27 }
   0xd   :  { %p421_p3 = scmp.ne.s32.totalorder %s25_s27, %s420_s6  ;;  %p426_p5 = scmp.lt.s32.totalorder %s420_s6, %s420_s6 }
   0xf   :  { %p427_p6 = por %p426_p5, %p425_p4 }
  0x11   :  { %p428_p7 = pnand %p427_p6, %p421_p3 }
  0x13   :  { %431 = shalt.err (!%p428_p7)
}
  0x14   :  { %s483_s12 = smov 128   ;;  %s484_s13 = smov 8  }
  0x15   :  { %30 = dma.hbm_to_vmem [thread:$0]  %s597_s1, 512, %s25_s27, [#allocation4], %s483_s12, %s483_s12, %s484_s13  }
  0x16   :  { %s485_s16 = smov [#allocation6]   ;;  %s432_s20 = scalar_lea.hbm %s598_s2, 256 }
  0x17   :  { %s36_s17 = sshll.u32 %s485_s16, 4  ;;  %p433_p8 = scmp.ne.s32.totalorder %s598_s2, %s432_s20  ;;  %s37_s17 = int_to_ptr.vmem [resolvable:$true] %s36_s17 }
  0x18   :  { %p436_p9 = scmp.lt.u32.totalorder %s432_s20, %s598_s2 }
  0x1a   :  { %p438_p10 = pnand %p436_p9, %p433_p8 }
  0x1c   :  { %441 = shalt.err (!%p438_p10)
}
  0x1d   :  { %s442_s25 = scalar_lea.vmem %s37_s17, 256  ;;  %p447_p12 = scmp.lt.s32.totalorder %s37_s17, %s37_s17 }
  0x1e   :  { %p443_p11 = scmp.ne.s32.totalorder %s37_s17, %s442_s25  ;;  %p448_p13 = scmp.lt.s32.totalorder %s442_s25, %s442_s25 }
  0x20   :  { %p449_p0 = por %p448_p13, %p447_p12 }
  0x22   :  { %p450_p1 = pnand %p449_p0, %p443_p11 }
  0x24   :  { %453 = shalt.err (!%p450_p1)
}
  0x25   :  { %42 = dma.hbm_to_vmem [thread:$0]  %s598_s2, 256, %s37_s17, [#allocation7], %s483_s12, %s483_s12, %s484_s13  }
  0x26   :  { %476 = dma.done.wait [#allocation4], 512  }
  0x27   :  { %477 = vsyncadd [#allocation4], 4294966784 }
  0x28   :  { %478 = dma.done.wait [#allocation7], 256  }
  0x29   :  { %479 = vsyncadd [#allocation7], 4294967040  ;;  %v486_v1 = vmov 0   ;;  %vm73_vm0 = vcmask 130048   ;;  %v57_v2 = vld [vmem:[%s596_s0] sm:$0xff]  ;;  %v58_v3 = vld [vmem:[%s596_s0 + $0x8] sm:$0xff]  ;;  %v257_v37 = vlaneseq }
  0x2a   :  { %408 = vset.pattern.permute.xlu0 %v486_v1  ;;  %409 = vset.pattern.permute.xlu1 %v486_v1  ;;  %v59_v4 = vld [vmem:[#allocation6] sm:$0xff]  ;;  %v388_v5 = vpack.c.bf16 %v58_v3, %v57_v2  ;;  %v60_v8 = vld [vmem:[#allocation6 + $0x8] sm:$0xff]  ;;  %v487_v20 = vmov 0.0|0.0   ;;  %vm488_vm1 = vmmov 0   ;;  %v489_v21 = vmov 0.0   ;;  %v243_v26 = vld [vmem:[#allocation3 + $0x18] sm:$0xff] }
  0x2b   :  { %371 = vmatprep.mubr.msk.f32.mxu0 %vm73_vm0, %v59_v4  ;;  %v61_v6 = vld [vmem:[%s599_s3] sm:$0xff]  ;;  %v62_v7 = vld [vmem:[%s599_s3 + $0x8] sm:$0xff]  ;;  %v242_v29 = vld [vmem:[#allocation3 + $0x10] sm:$0xff]  ;;  %v258_v38 = vshrl.u32 %v257_v37, 7  ;;  %s490_s13 = smov [#allocation8]  }
  0x2c   :  { %65 = vperm.xlu0 %408, %v61_v6   ;;  %389 = vmatprep.subr.bf16.mxu0 %v388_v5  ;;  %v157_v9 = vld [vmem:[%s600_s4] sm:$0xff]  ;;  %v158_v19 = vld [vmem:[%s600_s4 + $0x8] sm:$0xff]  ;;  %s341_s14 = sshll.u32 %s490_s13, 4  ;;  %s342_s14 = int_to_ptr.vmem [resolvable:$true] %s341_s14 }
  0x2d   :  { %391 = vmatpush3.bf16.msra.mxu0 %v388_v5  ;;  %378 = vmatprep.mubr.msk.f32.mxu1 %vm73_vm0, %v157_v9  ;;  %v251_v22 = vld [vmem:[#allocation2] sm:$0x1]  ;;  %v241_v23 = vld [vmem:[#allocation3 + $0x8] sm:$0xff]  ;;  %v240_v24 = vld [vmem:[#allocation3] sm:$0xff]  ;;  %v259_v39 = vsub.s32 0, %v258_v38  ;;  %s454_s15 = scalar_lea.vmem %s342_s14, 16  ;;  %p459_p3 = scmp.lt.s32.totalorder %s342_s14, %s342_s14 }
  0x2e   :  { %396 = vmatprep.subr.bf16.mxu0 %v487_v20  ;;  %254 = vperm.xlu1 %409, %v251_v22   ;;  %v250_v36 = vld [vmem:[%s601_s5] sm:$0x1]  ;;  %p455_p2 = scmp.ne.s32.totalorder %s342_s14, %s454_s15  ;;  %s458_s16 = scalar_lea.vmem %s342_s14, 32 }
  0x2f   :  { %p460_p4 = scmp.lt.s32.totalorder %s458_s16, %s454_s15 }
  0x30   :  { %70 = vperm.xlu0 %408, %v62_v7   ;;  %372 = vmatmul.mubr.msk.f32.vlgmr.msra.gmra.mrb[0].mxu0 %vm73_vm0, %v60_v8 }
  0x31   :  { %385 = vmatprep.mubr.msk.f32.mxu0 %vm488_vm1, %v489_v21  ;;  %p461_p5 = por %p460_p4, %p459_p3 }
  0x33   :  { %p462_p6 = pnand %p461_p5, %p455_p2 }
  0xab   :  { %v66_v10 = vpop.permute.xlu0 %65 }
  0xad   :  { %v255_v40 = vpop.permute.xlu1 %254 }
  0xae   :  { %v260_v41 = vrot.slane %v255_v40, %v259_v39 }
  0xaf   :  { %v71_v11 = vpop.permute.xlu0 %70 }
 0x103   :  { %v373_v12 = vpop.f32.mrb[0].mxu0 }
 0x104   :  { %v152_v13 = vadd.f32 %v373_v12, %v71_v11  ;;  %v146_v14 = vpop.f32.mrb[1].mxu0 }
 0x105   :  { %v147_v15 = vadd.f32 %v146_v14, %v66_v10 }
 0x106   :  { %v156_v16 = vmax.f32 %v152_v13, 0.0 }
 0x107   :  { %v155_v17 = vmax.f32 %v147_v15, 0.0 }
 0x109   :  { %v392_v18 = vpack.c.bf16 %v156_v16, %v155_v17 }
 0x10b   :  { %393 = vmatprep.subr.bf16.mxu1 %v392_v18 }
 0x10c   :  { %395 = vmatpush3.bf16.msra.mxu1 %v392_v18 }
 0x10f   :  { %379 = vmatmul.mubr.msk.f32.vlgmr.msra.gmra.mrb[0].mxu1 %vm73_vm0, %v158_v19 }
 0x1e2   :  { %v380_v25 = vpop.f32.mrb[0].mxu1 }
 0x1e3   :  { %v245_v27 = vmul.f32 %v380_v25, %v241_v23  ;;  %v231_v28 = vpop.f32.mrb[1].mxu1 }
 0x1e4   :  { %v244_v30 = vmul.f32 %v240_v24, %v231_v28 }
 0x1e5   :  { %v247_v31 = vadd.f32 %v245_v27, %v243_v26 }
 0x1e6   :  { %v246_v32 = vadd.f32 %v244_v30, %v242_v29 }
 0x1e7   :  { %v249_v33 = vmax.f32 %v247_v31, 0.0 }
 0x1e8   :  { %v248_v34 = vmax.f32 %v246_v32, 0.0 }
 0x1ea   :  { %v397_v35 = vpack.c.bf16 %v249_v33, %v248_v34 }
 0x1ec   :  { %398 = vmatpush3.bf16.msra.mxu0 %v397_v35 }
 0x1ef   :  { %386 = vmatmul.mubr.msk.f32.vlgmr.msra.gmra.mrb[2].mxu0 %vm73_vm0, %v250_v36 }
 0x2c2   :  { %v330_v42 = vpop.f32.mrb[2].mxu0 }
 0x2c3   :  { %v331_v43 = vadd.f32 %v330_v42, %v260_v41  ;;  %v387_v44 = vpop.f32.mrb[3].mxu0 }
 0x2c5   :  { %334 = vst [vmem:[#allocation8] sm:$0x1] %v331_v43 }
 0x2c6   :  { %465 = shalt.err (!%p462_p6)
}
 0x2c7   :  { %s466_s18 = scalar_lea.hbm %s603_s7, 16 }
 0x2c8   :  { %p467_p7 = scmp.ne.s32.totalorder %s603_s7, %s466_s18  ;;  %p470_p8 = scmp.lt.u32.totalorder %s466_s18, %s603_s7 }
 0x2ca   :  { %p472_p9 = pnand %p470_p8, %p467_p7 }
 0x2cc   :  { %475 = shalt.err (!%p472_p9)
}
 0x2cd   :  { %344 = dma.vmem_to_hbm [thread:$0]  %s342_s14, 16, %s603_s7, [#allocation5]  }
 0x2ce   :  { %480 = dma.done.wait [#allocation5], 16  }
 0x2cf   :  { %481 = vsyncadd [#allocation5], 4294967280 }
 0x2d0   :  { %348 = vsyncpa [#allocation4], 1 }
 0x2d1   :  { %349 = vsyncpa [#allocation7], 1 }
 0x2d2   :  { %350 = vsyncpa [#allocation5], 1 }

</bundles_post_ra>
